<compile_context>
chip_gen: v7x
topology: tpu7x:2x2x1
jax: 0.10.0
libtpu: 0.0.40
codegen_flags: <defaults>
</compile_context>

<pallas_src>
import functools
import math

import jax
import jax.numpy as jnp
from jax.experimental import pallas as pl
from jax.experimental.pallas import tpu as pltpu

_LANES = 128
_NCORES = 2                              # leading "parallel" grid axis (v7x: 2 TCs)
_DEFAULT_TILE_ROWS = 8192                # packed rows per grid step
_BLOCK_BYTES_BUDGET = 8 * 1024 * 1024    # combined (probs + true) bytes per step
_VMEM_LIMIT_BYTES = 32 * 1024 * 1024     # 2 inputs x 2 pipeline buffers fit easily


def _lane_pack_params(num_labels: int):
    """Lane-dense packing: (N, C) -> (N/G, L), L = lcm(C, 128), G = L // C."""
    lanes = (num_labels * _LANES) // math.gcd(num_labels, _LANES)
    return lanes, lanes // num_labels


# -----------------------------------------------------------------------------
# Kernel: threshold(probs) + per-lane count reduction into a per-core slab.
#
# Inputs : probs (np_rows, L), trues (np_rows, L)  -- native dtype, lane-packed
# Output : (NCORES, 3, 1, L) f32 fresh partial counts
#          row 0 = tp, row 1 = sum(pred), row 2 = sum(true)   (per lane)
# Grid   : (core, row_tile); the output block is constant along the row_tile
#          ("arbitrary") axis -> resident VMEM accumulator per core.
# -----------------------------------------------------------------------------
def _f1_partial_kernel(probs_ref, true_ref, out_ref, *, np_rows, tn, spc):
    c = pl.program_id(0)
    i = pl.program_id(1)

    @pl.when(i == 0)
    def _init():
        out_ref[...] = jnp.zeros_like(out_ref)

    row_start = (c * spc + i) * tn              # global packed-row offset (unclamped)
    lanes = probs_ref.shape[1]

    # Threshold + upcast in-vreg (strict '>' like the torch reference).
    p = (probs_ref[...] > 0.5).astype(jnp.float32)
    t = true_ref[...].astype(jnp.float32)

    def _accum(p, t):
        # Cross-sublane column sums run on the XLU slot -- free filler here.
        out_ref[0] += jnp.sum(p * t, axis=0, keepdims=True)
        out_ref[1] += jnp.sum(p, axis=0, keepdims=True)
        out_ref[2] += jnp.sum(t, axis=0, keepdims=True)

    @pl.when(row_start + tn <= np_rows)         # fully-valid block: lean hot path
    def _full():
        _accum(p, t)

    @pl.when(row_start + tn > np_rows)          # overhang / OOB block: mask rows
    def _ragged():
        rows = row_start + jax.lax.broadcasted_iota(jnp.int32, (tn, lanes), 0)
        valid = rows < np_rows
        _accum(jnp.where(valid, p, 0.0), jnp.where(valid, t, 0.0))


def _f1_partial_counts(probs2d, trues2d, tile_rows):
    """probs2d/trues2d: (np_rows, lanes), lane-packed, native dtype.
    Returns (3, lanes) f32 partial counts [tp, sum_pred, sum_true]."""
    np_rows, lanes = probs2d.shape
    tile_rows = max(8, (int(tile_rows) // 8) * 8)

    # Cap the row tile so combined per-step input blocks stay <= ~8 MiB
    # (x2 pipeline buffers = 16 MiB -> fits all generations' scoped VMEM).
    bytes_per_row = lanes * (probs2d.dtype.itemsize + trues2d.dtype.itemsize)
    cap_rows = max(8, ((_BLOCK_BYTES_BUDGET // bytes_per_row) // 8) * 8)
    limit = min(tile_rows, cap_rows)
    tn = np_rows if np_rows <= limit else limit      # full-extent or 8-mult block

    steps_total = pl.cdiv(np_rows, tn)
    spc = pl.cdiv(steps_total, _NCORES)              # grid steps per core
    last_block = steps_total - 1

    def in_map(c, i):
        # Clamp so fully-OOB grid steps re-read the last valid block; their
        # contribution is zeroed in-kernel by the row mask.
        return (jnp.minimum(c * spc + i, last_block), 0)

    kernel = functools.partial(_f1_partial_kernel, np_rows=np_rows, tn=tn, spc=spc)

    partials = pl.pallas_call(
        kernel,
        out_shape=jax.ShapeDtypeStruct((_NCORES, 3, 1, lanes), jnp.float32),
        grid=(_NCORES, spc),
        in_specs=[
            pl.BlockSpec((tn, lanes), in_map),
            pl.BlockSpec((tn, lanes), in_map),
        ],
        # Core axis squeezed (None) -> kernel sees a (3, 1, lanes) slab per core.
        out_specs=pl.BlockSpec((None, 3, 1, lanes), lambda c, i: (c, 0, 0, 0)),
        compiler_params=pltpu.CompilerParams(
            dimension_semantics=("parallel", "arbitrary"),
            vmem_limit_bytes=_VMEM_LIMIT_BYTES,
        ),
    )(probs2d, trues2d)

    return partials.sum(axis=(0, 2))                 # fold cores -> (3, lanes)


@functools.partial(jax.jit, static_argnames=("tile_rows",))
def f1_update_counts(counts, y_probs, y_true, *, tile_rows=_DEFAULT_TILE_ROWS):
    """counts (3, C) int32 running [tp, sum_pred, sum_true]; returns updated."""
    n, c = y_probs.shape
    lanes, group = _lane_pack_params(c)

    n_main = (n // group) * group
    new = jnp.zeros((3, c), jnp.float32)

    if n_main > 0:
        if n_main == n:
            probs_m, trues_m = y_probs, y_true       # reshape below is a free bitcast
        else:
            # TODO(synk): this prefix slice materializes one extra copy of the
            # main rows when N % group != 0; keep batch sizes a multiple of
            # group (= lcm(C,128)/C) for the fully zero-copy path.
            probs_m, trues_m = y_probs[:n_main], y_true[:n_main]
        partial = _f1_partial_counts(
            probs_m.reshape(n_main // group, lanes),
            trues_m.reshape(n_main // group, lanes),
            tile_rows,
        )
        new = new + partial.reshape(3, group, c).sum(axis=1)

    if n_main < n:
        # Ragged tail: fewer than `group` (<= 128) rows -- negligible, plain JAX.
        p_t = (y_probs[n_main:] > 0.5).astype(jnp.float32)
        t_t = y_true[n_main:].astype(jnp.float32)
        new = new + jnp.stack(
            [jnp.sum(p_t * t_t, axis=0), jnp.sum(p_t, axis=0), jnp.sum(t_t, axis=0)]
        )

    return counts + new.astype(counts.dtype)


# -----------------------------------------------------------------------------
# F1Score "module" mirroring the PyTorch semantics.
# -----------------------------------------------------------------------------
class F1Score:
    def __init__(self, num_labels: int, tile_rows: int = _DEFAULT_TILE_ROWS):
        self.num_labels = num_labels
        self.tile_rows = int(tile_rows)
        self.lanes, self.group = _lane_pack_params(num_labels)
        self.reset()

    def reset(self):
        # Fixed-shape streaming summary of the torch label lists:
        # int32 [tp, sum_pred, sum_true] per class (exact up to 2^31 samples).
        self.counts = jnp.zeros((3, self.num_labels), dtype=jnp.int32)

    def forward(self, y_probs: jax.Array, y_true: jax.Array):
        # Fused threshold + count update: single native-dtype HBM pass.
        self.counts = f1_update_counts(
            self.counts, y_probs, y_true, tile_rows=self.tile_rows
        )

    __call__ = forward

    def get_metric(self):
        cnt = self.counts.astype(jnp.float32)
        tp, sum_p, sum_t = cnt[0], cnt[1], cnt[2]
        denom = sum_p + sum_t  # == 2*tp + fp + fn
        # sklearn f1_score(average=None, zero_division=0)
        return jnp.where(denom > 0.0, 2.0 * tp / jnp.where(denom > 0.0, denom, 1.0), 0.0)


if __name__ == "__main__":
    num_labels = 4  # group = 32, lanes = 128

    key = jax.random.PRNGKey(0)
    k1, k2, k3, k4 = jax.random.split(key, 4)

    # Native low-precision inputs (no wrapper-side f32 upcast).
    y_probs1 = jax.random.uniform(k1, (100, num_labels), dtype=jnp.float32).astype(jnp.bfloat16)
    y_true1 = (jax.random.uniform(k2, (100, num_labels)) > 0.5).astype(jnp.bfloat16)
    y_probs2 = jax.random.uniform(k3, (608, num_labels), dtype=jnp.float32).astype(jnp.bfloat16)
    y_true2 = (jax.random.uniform(k4, (608, num_labels)) > 0.5).astype(jnp.bfloat16)

    # tile_rows=8 only to exercise multi-step grids, the two-core split, block
    # clamping and ragged-block masking at demo scale; production default is
    # 8192 packed rows (2-4 MiB input blocks).
    metric = F1Score(num_labels, tile_rows=8)
    metric(y_probs1, y_true1)                 # 96 packed-main rows + 4-row JAX tail
    jax.block_until_ready(metric.counts)
    metric(y_probs2, y_true2)                 # 19 packed rows -> masked last block
    f1 = jax.block_until_ready(metric.get_metric())

    # Pure-JAX reference mirroring the torch module + sklearn.f1_score.
    p_all = jnp.concatenate(
        [(y_probs1.astype(jnp.float32) > 0.5), (y_probs2.astype(jnp.float32) > 0.5)],
        axis=0,
    ).astype(jnp.float32)
    t_all = jnp.concatenate([y_true1, y_true2], axis=0).astype(jnp.float32)
    tp_ref = jnp.sum(p_all * t_all, axis=0)
    denom_ref = jnp.sum(p_all, axis=0) + jnp.sum(t_all, axis=0)
    f1_ref = jnp.where(denom_ref > 0, 2.0 * tp_ref / jnp.where(denom_ref > 0, denom_ref, 1.0), 0.0)

    assert f1.shape == (num_labels,)
    assert jnp.allclose(f1, f1_ref, atol=1e-6), (f1, f1_ref)

    print("KERNEL_OK")
</pallas_src>

<mosaic_0001>
module attributes {stable_mosaic.version = 11 : i64} {
  func.func @_f1_partial_kernel(%arg0: i32, %arg1: i32, %arg2: memref<3x128xbf16, #tpu.memory_space<vmem>>, %arg3: memref<3x128xbf16, #tpu.memory_space<vmem>>, %arg4: memref<1x3x1x128xf32, #tpu.memory_space<vmem>>) attributes {dimension_semantics = [#tpu.dimension_semantics<parallel>, #tpu.dimension_semantics<arbitrary>], iteration_bounds = array<i64: 2, 1>, scalar_prefetch = 0 : i64, scratch_operands = 0 : i64, tpu.core_type = #tpu.core_type<tc>, window_params = [{transform_indices = @transform_0, window_bounds = array<i64: 3, 128>}, {transform_indices = @transform_1, window_bounds = array<i64: 3, 128>}, {transform_indices = @transform_2, window_bounds = array<i64: 1, 3, 1, 128>}]} {
    %c0_i32 = arith.constant 0 : i32
    %0 = arith.cmpi eq, %arg1, %c0_i32 : i32
    %1 = arith.extui %0 : i1 to i32
    %c0_i32_0 = arith.constant 0 : i32
    %2 = arith.cmpi ne, %1, %c0_i32_0 : i32
    scf.if %2 {
      %cst_10 = arith.constant 0.000000e+00 : f32
      %21 = vector.broadcast %cst_10 : f32 to vector<3x1x128xf32>
      %c0_11 = arith.constant 0 : index
      %c0_12 = arith.constant 0 : index
      %c0_13 = arith.constant 0 : index
      %c0_14 = arith.constant 0 : index
      %22 = vector.load %arg4[%c0_11, %c0_12, %c0_13, %c0_14] : memref<1x3x1x128xf32, #tpu.memory_space<vmem>>, vector<1x3x1x128xf32>
      %23 = vector.shape_cast %22 : vector<1x3x1x128xf32> to vector<3x1x128xf32>
      %24 = vector.shape_cast %21 : vector<3x1x128xf32> to vector<1x3x1x128xf32>
      tpu.vector_store %arg4[%c0_11, %c0_12, %c0_13, %c0_14], %24 {strides = array<i32>} : memref<1x3x1x128xf32, #tpu.memory_space<vmem>>, vector<1x3x1x128xf32>,
    } else {
    }
    %c1_i32 = arith.constant 1 : i32
    %3 = arith.muli %arg0, %c1_i32 : i32
    %4 = arith.addi %3, %arg1 : i32
    %c3_i32 = arith.constant 3 : i32
    %5 = arith.muli %4, %c3_i32 : i32
    %c0 = arith.constant 0 : index
    %c0_1 = arith.constant 0 : index
    %6 = vector.load %arg2[%c0, %c0_1] : memref<3x128xbf16, #tpu.memory_space<vmem>>, vector<3x128xbf16>
    %cst = arith.constant 5.000000e-01 : bf16
    %7 = vector.broadcast %cst : bf16 to vector<3x128xbf16>
    %8 = arith.cmpf ogt, %6, %7 : vector<3x128xbf16>
    %9 = arith.extui %8 : vector<3x128xi1> to vector<3x128xi32>
    %10 = arith.sitofp %9 : vector<3x128xi32> to vector<3x128xf32>
    %c0_2 = arith.constant 0 : index
    %c0_3 = arith.constant 0 : index
    %11 = vector.load %arg3[%c0_2, %c0_3] : memref<3x128xbf16, #tpu.memory_space<vmem>>, vector<3x128xbf16>
    %12 = arith.extf %11 : vector<3x128xbf16> to vector<3x128xf32>
    %c3_i32_4 = arith.constant 3 : i32
    %13 = arith.addi %5, %c3_i32_4 : i32
    %c3_i32_5 = arith.constant 3 : i32
    %14 = arith.cmpi sle, %13, %c3_i32_5 : i32
    %15 = arith.extui %14 : i1 to i32
    %c0_i32_6 = arith.constant 0 : i32
    %16 = arith.cmpi ne, %15, %c0_i32_6 : i32
    scf.if %16 {
      %c0_10 = arith.constant 0 : index
      %c0_11 = arith.constant 0 : index
      %c0_12 = arith.constant 0 : index
      %c0_13 = arith.constant 0 : index
      %21 = vector.load %arg4[%c0_10, %c0_11, %c0_12, %c0_13] : memref<1x3x1x128xf32, #tpu.memory_space<vmem>>, vector<1x1x1x128xf32>
      %22 = vector.shape_cast %21 : vector<1x1x1x128xf32> to vector<1x128xf32>
      %23 = arith.mulf %10, %12 : vector<3x128xf32>
      %cst_14 = arith.constant dense<0.000000e+00> : vector<128xf32>
      %24 = vector.multi_reduction <add>, %23, %cst_14 [0] : vector<3x128xf32> to vector<128xf32>
      %25 = vector.shape_cast %24 : vector<128xf32> to vector<1x128xf32>
      %26 = arith.addf %22, %25 : vector<1x128xf32>
      %c0_15 = arith.constant 0 : index
      %c0_16 = arith.constant 0 : index
      %c0_17 = arith.constant 0 : index
      %c0_18 = arith.constant 0 : index
      %27 = vector.load %arg4[%c0_15, %c0_16, %c0_17, %c0_18] : memref<1x3x1x128xf32, #tpu.memory_space<vmem>>, vector<1x1x1x128xf32>
      %28 = vector.shape_cast %27 : vector<1x1x1x128xf32> to vector<1x128xf32>
      %29 = vector.shape_cast %26 : vector<1x128xf32> to vector<1x1x1x128xf32>
      tpu.vector_store %arg4[%c0_15, %c0_16, %c0_17, %c0_18], %29 {strides = array<i32>} : memref<1x3x1x128xf32, #tpu.memory_space<vmem>>, vector<1x1x1x128xf32>,
      %c0_19 = arith.constant 0 : index
      %c1 = arith.constant 1 : index
      %c0_20 = arith.constant 0 : index
      %c0_21 = arith.constant 0 : index
      %30 = vector.load %arg4[%c0_19, %c1, %c0_20, %c0_21] : memref<1x3x1x128xf32, #tpu.memory_space<vmem>>, vector<1x1x1x128xf32>
      %31 = vector.shape_cast %30 : vector<1x1x1x128xf32> to vector<1x128xf32>
      %cst_22 = arith.constant dense<0.000000e+00> : vector<128xf32>
      %32 = vector.multi_reduction <add>, %10, %cst_22 [0] : vector<3x128xf32> to vector<128xf32>
      %33 = vector.shape_cast %32 : vector<128xf32> to vector<1x128xf32>
      %34 = arith.addf %31, %33 : vector<1x128xf32>
      %c0_23 = arith.constant 0 : index
      %c1_24 = arith.constant 1 : index
      %c0_25 = arith.constant 0 : index
      %c0_26 = arith.constant 0 : index
      %35 = vector.load %arg4[%c0_23, %c1_24, %c0_25, %c0_26] : memref<1x3x1x128xf32, #tpu.memory_space<vmem>>, vector<1x1x1x128xf32>
      %36 = vector.shape_cast %35 : vector<1x1x1x128xf32> to vector<1x128xf32>
      %37 = vector.shape_cast %34 : vector<1x128xf32> to vector<1x1x1x128xf32>
      tpu.vector_store %arg4[%c0_23, %c1_24, %c0_25, %c0_26], %37 {strides = array<i32>} : memref<1x3x1x128xf32, #tpu.memory_space<vmem>>, vector<1x1x1x128xf32>,
      %c0_27 = arith.constant 0 : index
      %c2 = arith.constant 2 : index
      %c0_28 = arith.constant 0 : index
      %c0_29 = arith.constant 0 : index
      %38 = vector.load %arg4[%c0_27, %c2, %c0_28, %c0_29] : memref<1x3x1x128xf32, #tpu.memory_space<vmem>>, vector<1x1x1x128xf32>
      %39 = vector.shape_cast %38 : vector<1x1x1x128xf32> to vector<1x128xf32>
      %cst_30 = arith.constant dense<0.000000e+00> : vector<128xf32>
      %40 = vector.multi_reduction <add>, %12, %cst_30 [0] : vector<3x128xf32> to vector<128xf32>
      %41 = vector.shape_cast %40 : vector<128xf32> to vector<1x128xf32>
      %42 = arith.addf %39, %41 : vector<1x128xf32>
      %c0_31 = arith.constant 0 : index
      %c2_32 = arith.constant 2 : index
      %c0_33 = arith.constant 0 : index
      %c0_34 = arith.constant 0 : index
      %43 = vector.load %arg4[%c0_31, %c2_32, %c0_33, %c0_34] : memref<1x3x1x128xf32, #tpu.memory_space<vmem>>, vector<1x1x1x128xf32>
      %44 = vector.shape_cast %43 : vector<1x1x1x128xf32> to vector<1x128xf32>
      %45 = vector.shape_cast %42 : vector<1x128xf32> to vector<1x1x1x128xf32>
      tpu.vector_store %arg4[%c0_31, %c2_32, %c0_33, %c0_34], %45 {strides = array<i32>} : memref<1x3x1x128xf32, #tpu.memory_space<vmem>>, vector<1x1x1x128xf32>,
    } else {
    }
    %c3_i32_7 = arith.constant 3 : i32
    %17 = arith.addi %5, %c3_i32_7 : i32
    %c3_i32_8 = arith.constant 3 : i32
    %18 = arith.cmpi sgt, %17, %c3_i32_8 : i32
    %19 = arith.extui %18 : i1 to i32
    %c0_i32_9 = arith.constant 0 : i32
    %20 = arith.cmpi ne, %19, %c0_i32_9 : i32
    scf.if %20 {
      %21 = tpu.iota {dimensions = array<i32: 0>} : vector<3x128xi32>
      %22 = vector.broadcast %5 : i32 to vector<3x128xi32>
      %23 = arith.addi %22, %21 : vector<3x128xi32>
      %c3_i32_10 = arith.constant 3 : i32
      %24 = vector.broadcast %c3_i32_10 : i32 to vector<3x128xi32>
      %25 = arith.cmpi slt, %23, %24 : vector<3x128xi32>
      %cst_11 = arith.constant 0.000000e+00 : f32
      %26 = vector.broadcast %cst_11 : f32 to vector<3x128xf32>
      %27 = arith.select %25, %10, %26 : vector<3x128xi1>, vector<3x128xf32>
      %cst_12 = arith.constant 0.000000e+00 : f32
      %28 = vector.broadcast %cst_12 : f32 to vector<3x128xf32>
      %29 = arith.select %25, %12, %28 : vector<3x128xi1>, vector<3x128xf32>
      %c0_13 = arith.constant 0 : index
      %c0_14 = arith.constant 0 : index
      %c0_15 = arith.constant 0 : index
      %c0_16 = arith.constant 0 : index
      %30 = vector.load %arg4[%c0_13, %c0_14, %c0_15, %c0_16] : memref<1x3x1x128xf32, #tpu.memory_space<vmem>>, vector<1x1x1x128xf32>
      %31 = vector.shape_cast %30 : vector<1x1x1x128xf32> to vector<1x128xf32>
      %32 = arith.mulf %27, %29 : vector<3x128xf32>
      %cst_17 = arith.constant dense<0.000000e+00> : vector<128xf32>
      %33 = vector.multi_reduction <add>, %32, %cst_17 [0] : vector<3x128xf32> to vector<128xf32>
      %34 = vector.shape_cast %33 : vector<128xf32> to vector<1x128xf32>
      %35 = arith.addf %31, %34 : vector<1x128xf32>
      %c0_18 = arith.constant 0 : index
      %c0_19 = arith.constant 0 : index
      %c0_20 = arith.constant 0 : index
      %c0_21 = arith.constant 0 : index
      %36 = vector.load %arg4[%c0_18, %c0_19, %c0_20, %c0_21] : memref<1x3x1x128xf32, #tpu.memory_space<vmem>>, vector<1x1x1x128xf32>
      %37 = vector.shape_cast %36 : vector<1x1x1x128xf32> to vector<1x128xf32>
      %38 = vector.shape_cast %35 : vector<1x128xf32> to vector<1x1x1x128xf32>
      tpu.vector_store %arg4[%c0_18, %c0_19, %c0_20, %c0_21], %38 {strides = array<i32>} : memref<1x3x1x128xf32, #tpu.memory_space<vmem>>, vector<1x1x1x128xf32>,
      %c0_22 = arith.constant 0 : index
      %c1 = arith.constant 1 : index
      %c0_23 = arith.constant 0 : index
      %c0_24 = arith.constant 0 : index
      %39 = vector.load %arg4[%c0_22, %c1, %c0_23, %c0_24] : memref<1x3x1x128xf32, #tpu.memory_space<vmem>>, vector<1x1x1x128xf32>
      %40 = vector.shape_cast %39 : vector<1x1x1x128xf32> to vector<1x128xf32>
      %cst_25 = arith.constant dense<0.000000e+00> : vector<128xf32>
      %41 = vector.multi_reduction <add>, %27, %cst_25 [0] : vector<3x128xf32> to vector<128xf32>
      %42 = vector.shape_cast %41 : vector<128xf32> to vector<1x128xf32>
      %43 = arith.addf %40, %42 : vector<1x128xf32>
      %c0_26 = arith.constant 0 : index
      %c1_27 = arith.constant 1 : index
      %c0_28 = arith.constant 0 : index
      %c0_29 = arith.constant 0 : index
      %44 = vector.load %arg4[%c0_26, %c1_27, %c0_28, %c0_29] : memref<1x3x1x128xf32, #tpu.memory_space<vmem>>, vector<1x1x1x128xf32>
      %45 = vector.shape_cast %44 : vector<1x1x1x128xf32> to vector<1x128xf32>
      %46 = vector.shape_cast %43 : vector<1x128xf32> to vector<1x1x1x128xf32>
      tpu.vector_store %arg4[%c0_26, %c1_27, %c0_28, %c0_29], %46 {strides = array<i32>} : memref<1x3x1x128xf32, #tpu.memory_space<vmem>>, vector<1x1x1x128xf32>,
      %c0_30 = arith.constant 0 : index
      %c2 = arith.constant 2 : index
      %c0_31 = arith.constant 0 : index
      %c0_32 = arith.constant 0 : index
      %47 = vector.load %arg4[%c0_30, %c2, %c0_31, %c0_32] : memref<1x3x1x128xf32, #tpu.memory_space<vmem>>, vector<1x1x1x128xf32>
      %48 = vector.shape_cast %47 : vector<1x1x1x128xf32> to vector<1x128xf32>
      %cst_33 = arith.constant dense<0.000000e+00> : vector<128xf32>
      %49 = vector.multi_reduction <add>, %29, %cst_33 [0] : vector<3x128xf32> to vector<128xf32>
      %50 = vector.shape_cast %49 : vector<128xf32> to vector<1x128xf32>
      %51 = arith.addf %48, %50 : vector<1x128xf32>
      %c0_34 = arith.constant 0 : index
      %c2_35 = arith.constant 2 : index
      %c0_36 = arith.constant 0 : index
      %c0_37 = arith.constant 0 : index
      %52 = vector.load %arg4[%c0_34, %c2_35, %c0_36, %c0_37] : memref<1x3x1x128xf32, #tpu.memory_space<vmem>>, vector<1x1x1x128xf32>
      %53 = vector.shape_cast %52 : vector<1x1x1x128xf32> to vector<1x128xf32>
      %54 = vector.shape_cast %51 : vector<1x128xf32> to vector<1x1x1x128xf32>
      tpu.vector_store %arg4[%c0_34, %c2_35, %c0_36, %c0_37], %54 {strides = array<i32>} : memref<1x3x1x128xf32, #tpu.memory_space<vmem>>, vector<1x1x1x128xf32>,
    } else {
    }
    return
  }
  func.func @transform_0(%arg0: i32, %arg1: i32) -> (i32, i32) {
    %c1_i32 = arith.constant 1 : i32
    %0 = arith.muli %arg0, %c1_i32 : i32
    %1 = arith.addi %0, %arg1 : i32
    %c0_i32 = arith.constant 0 : i32
    %2 = arith.minsi %1, %c0_i32 : i32
    %c0_i32_0 = arith.constant 0 : i32
    %c0_i32_1 = arith.constant 0 : i32
    return %2, %c0_i32_0 : i32, i32
  }
  func.func @transform_1(%arg0: i32, %arg1: i32) -> (i32, i32) {
    %c1_i32 = arith.constant 1 : i32
    %0 = arith.muli %arg0, %c1_i32 : i32
    %1 = arith.addi %0, %arg1 : i32
    %c0_i32 = arith.constant 0 : i32
    %2 = arith.minsi %1, %c0_i32 : i32
    %c0_i32_0 = arith.constant 0 : i32
    %c0_i32_1 = arith.constant 0 : i32
    return %2, %c0_i32_0 : i32, i32
  }
  func.func @transform_2(%arg0: i32, %arg1: i32) -> (i32, i32, i32, i32) {
    %c0_i32 = arith.constant 0 : i32
    %c0_i32_0 = arith.constant 0 : i32
    %c0_i32_1 = arith.constant 0 : i32
    %c0_i32_2 = arith.constant 0 : i32
    return %arg0, %c0_i32, %c0_i32_0, %c0_i32_1 : i32, i32, i32, i32
  }
}

</mosaic_0001>

<bundles_post_ra>
// kernel: f1_update_counts.1
= control target key start
LH: loop header
LB: loop body
LE: loop exit
PB: predicated region body
PF: predicated region fallthrough
CT: control target
= control target key end

     0   :  { %s482_s9 = smov 0   ;;  %s484_s10 = smov 0   ;;  %s550_s0 = inlined_call_operand.vmem [shape: bf16[3,128], index: 0, kind: input, shape index: {}]   ;;  %s551_s1 = inlined_call_operand.vmem [shape: bf16[3,128], index: 1, kind: input, shape index: {}]   ;;  %s552_s2 = inlined_call_operand.vmem [shape: f32[2,3,1,128], index: 2, kind: output, shape index: {}]  }
   0x1   :  { %s486_s11 = smov 0  }
   0x2 LB: > { %s24_s12 = sadd.s32 1, %s459_s10  ;;  %p392_p0 = scmp.ge.s32.totalorder %s463_s11, 1  ;;  %s463_s11 = sphi %s486_s11, %s12_s11   ;;  %s459_s10 = sphi %s484_s10, %s554_s10   ;;  %s455_s9 = sphi %s482_s9, %s553_s9  }
   0x3   : > { %p26_p1 = scmp.ge.s32.totalorder %s24_s12, 2  ;;  %p156_p2 = scmp.lt.s32.totalorder %s463_s11, 3 }
   0x5   : > { %s556_s12 = smov (%p26_p1, %s24_s12), 0  ;;  %p157_p3 = pnand %p392_p0, %p156_p2 }
   0x6   : > { %p187_p4 = scmp.lt.s32.totalorder (!%p157_p3), %s455_s9, 0  ;;  %p206_p5 = scmp.lt.s32.totalorder (!%p157_p3), %s455_s9, 1  ;;  %v465_v2 = vmov (!%p157_p3), 0.0   ;;  %v466_v4 = vmov (!%p157_p3), 0  }
   0x7   : > { %160 = sbr.rel (%p157_p3) target bundleno = 71 (0x47), region = 28 }
   0x8   : > { %s221_s13 = smul.u32 (!%p157_p3), 3, %s455_s9 }
   0xa   : > { %s509_s17 = sadd.s32 (!%p157_p3), 3, %s221_s13 }
   0xb   : > { %p402_p6 = scmp.gt.s32.totalorder (!%p157_p3), %s509_s17, 3 }
   0xe   : > { %s188_s14 = scalar_select %p187_p4, %s455_s9, 0 }
   0xf   : > { %s207_s15 = scalar_select %p206_p5, %s455_s9, 1 }
  0x10   : > { %s558_s14 = smov (!%p187_p4, %s188_s14), 0  ;;  %vm238_vm2 = vcmask (!%p402_p6), 1042432  }
  0x11   : > { %s414_s16 = smul.u32 3, %s207_s15  ;;  %s396_s18 = sshll.u32 %s558_s14, 1 }
  0x12   : > { %s192_s21 = scalar_lea.vmem %s550_s0, %s396_s18  ;;  %s202_s24 = scalar_lea.vmem %s551_s1, %s396_s18 }
  0x13   : > { %s520_s27 = scalar_lea.vmem %s552_s2, %s414_s16  ;;  %v222_v0 = vld [vmem:[%s192_s21] sm:$0x3]  ;;  %235 = sbr.rel (%p402_p6) target bundleno = 44 (0x2c), region = 36 }
  0x14   : > { %v229_v1 = vld [vmem:[%s202_s24] sm:$0x3]  ;;  %217 = vst [vmem:[%s520_s27] sm:$0x1] %v465_v2  ;;  %vm223_vm0 = vcmp.gt.bf16.partialorder %v222_v0, 1056980736 }
  0x15   : > { %v230_v3 = vunpack.c.l.bf16 %v229_v1  ;;  %218 = vst [vmem:[%s520_s27 + $0x1] sm:$0x1] %v465_v2  ;;  %219 = vst [vmem:[%s520_s27 + $0x2] sm:$0x1] %v465_v2  ;;  %v224_v5 = vsel %vm223_vm0, 65537, %v466_v4 }
  0x16   : > { %v225_v6 = vunpack.c.l.b16 %v224_v5 }
  0x17   : > { %v261_v10 = vsel (!%p402_p6), %vm238_vm2, %v230_v3, 0.0 }
  0x18   : > { %vm226_vm1 = vcmp.ne.s32.totalorder %v225_v6, 0  ;;  %v262_v13 = vrot.slane (!%p402_p6), %v261_v10, 4 }
  0x19   : > { %v401_v7 = vsel %vm226_vm1, 1.0, %v465_v2 }
  0x1a   : > { %v237_v8 = vmul.f32 %v401_v7, %v230_v3  ;;  %v250_v9 = vsel %vm238_vm2, %v401_v7, 0.0  ;;  %v263_v16 = vadd.f32 %v262_v13, %v261_v10 }
  0x1b   : > { %v251_v12 = vrot.slane %v250_v9, 4  ;;  %v236_v29 = vld [vmem:[%s520_s27] sm:$0x1] }
  0x1c   : > { %v239_v11 = vsel %vm238_vm2, %v237_v8, 0.0  ;;  %v264_v19 = vrot.slane %v263_v16, 2  ;;  %v403_v27 = vld [vmem:[%s520_s27 + $0x1] sm:$0x1]  ;;  %v405_v28 = vld [vmem:[%s520_s27 + $0x2] sm:$0x1] }
  0x1d   : > { %v240_v14 = vrot.slane %v239_v11, 4  ;;  %v252_v15 = vadd.f32 %v251_v12, %v250_v9 }
  0x1e   : > { %v265_v22 = vadd.f32 %v264_v19, %v263_v16 }
  0x1f   : > { %v241_v17 = vadd.f32 %v240_v14, %v239_v11  ;;  %v253_v18 = vrot.slane %v252_v15, 2 }
  0x20   : > { %v266_v25 = vrot.slane %v265_v22, 1 }
  0x21   : > { %v242_v20 = vrot.slane %v241_v17, 2  ;;  %v254_v21 = vadd.f32 %v253_v18, %v252_v15 }
  0x22   : > { %v267_v31 = vadd.f32 %v266_v25, %v265_v22 }
  0x23   : > { %v243_v23 = vadd.f32 %v242_v20, %v241_v17  ;;  %v255_v24 = vrot.slane %v254_v21, 1 }
  0x24   : > { %v268_v34 = vadd.f32 %v405_v28, %v267_v31 }
  0x25   : > { %v244_v26 = vrot.slane %v243_v23, 1  ;;  %v256_v30 = vadd.f32 %v255_v24, %v254_v21 }
  0x26   : > { %406 = vst [vmem:[%s520_s27 + $0x2] sm:$0x1] %v268_v34 }
  0x27   : > { %v245_v32 = vadd.f32 %v244_v26, %v243_v23  ;;  %v257_v33 = vadd.f32 %v403_v27, %v256_v30 }
  0x29   : > { %v246_v35 = vadd.f32 %v245_v32, %v236_v29  ;;  %404 = vst [vmem:[%s520_s27 + $0x1] sm:$0x1] %v257_v33 }
  0x2b   : > { %247 = vst [vmem:[%s520_s27] sm:$0x1] %v246_v35 }
  0x2c PF: > { %p407_p7 = scmp.le.s32.totalorder %s509_s17, 3 }
  0x2d   : > { %v274_v36 = vlaneseq (!%p407_p7)  ;;  %v276_v37 = vstv (!%p407_p7), %s221_s13  ;;  %vm283_vm3 = vcmask (!%p407_p7), 1042432  }
  0x2e   : > { %273 = sbr.rel (%p407_p7) target bundleno = 71 (0x47), region = 40  ;;  %v410_v61 = vld [vmem:[%s520_s27 + $0x2] sm:$0x1] (!%p407_p7) }
  0x2f   : > { %v275_v38 = vshrl.u32 (!%p407_p7), %v274_v36, 7 }
  0x30   : > { %v408_v60 = vld [vmem:[%s520_s27 + $0x1] sm:$0x1] (!%p407_p7) }
  0x31   : > { %v277_v39 = vadd.s32 (!%p407_p7), %v276_v37, %v275_v38 }
  0x32   : > { %v281_v1 = vld [vmem:[%s520_s27] sm:$0x1] (!%p407_p7) }
  0x33   : > { %vm278_vm4 = vcmp.lt.s32.totalorder (!%p407_p7), %v277_v39, 3 }
  0x34   : > { %v279_v40 = vsel (!%p407_p7), %vm278_vm4, %v401_v7, 0.0  ;;  %v280_v41 = vsel (!%p407_p7), %vm278_vm4, %v230_v3, 0.0 }
  0x35   : > { %v282_v42 = vmul.f32 %v280_v41, %v279_v40  ;;  %v295_v43 = vsel %vm283_vm3, %v279_v40, 0.0  ;;  %v306_v44 = vsel %vm283_vm3, %v280_v41, 0.0 }
  0x36   : > { %v296_v45 = vrot.slane %v295_v43, 4  ;;  %v307_v46 = vrot.slane %v306_v44, 4 }
  0x37   : > { %v284_v47 = vsel %vm283_vm3, %v282_v42, 0.0 }
  0x38   : > { %v285_v48 = vrot.slane %v284_v47, 4  ;;  %v297_v49 = vadd.f32 %v296_v45, %v295_v43  ;;  %v308_v50 = vadd.f32 %v307_v46, %v306_v44 }
  0x3a   : > { %v286_v51 = vadd.f32 %v285_v48, %v284_v47  ;;  %v298_v52 = vrot.slane %v297_v49, 2  ;;  %v309_v53 = vrot.slane %v308_v50, 2 }
  0x3c   : > { %v287_v54 = vrot.slane %v286_v51, 2  ;;  %v299_v55 = vadd.f32 %v298_v52, %v297_v49  ;;  %v310_v56 = vadd.f32 %v309_v53, %v308_v50 }
  0x3e   : > { %v288_v57 = vadd.f32 %v287_v54, %v286_v51  ;;  %v300_v58 = vrot.slane %v299_v55, 1  ;;  %v311_v59 = vrot.slane %v310_v56, 1 }
  0x40   : > { %v289_v62 = vrot.slane %v288_v57, 1  ;;  %v301_v63 = vadd.f32 %v300_v58, %v299_v55  ;;  %v312_v0 = vadd.f32 %v311_v59, %v310_v56 }
  0x42   : > { %v290_v2 = vadd.f32 %v289_v62, %v288_v57  ;;  %v302_v3 = vadd.f32 %v408_v60, %v301_v63  ;;  %v313_v4 = vadd.f32 %v410_v61, %v312_v0 }
  0x44   : > { %v291_v5 = vadd.f32 %v290_v2, %v281_v1  ;;  %409 = vst [vmem:[%s520_s27 + $0x1] sm:$0x1] %v302_v3  ;;  %411 = vst [vmem:[%s520_s27 + $0x2] sm:$0x1] %v313_v4 }
  0x46   : > { %292 = vst [vmem:[%s520_s27] sm:$0x1] %v291_v5 }
  0x47 PF: > { %s12_s11 = sadd.s32 1, %s463_s11   ;;  %s553_s9 = smov %s459_s10 }
  0x48   : > { %p9_p8 = scmp.ge.s32.totalorder %s12_s11, 4   ;;  %s554_s10 = smov %s556_s12 }
  0x4a   :  { %11 = sbr.rel (!%p9_p8) target bundleno = 2 (0x2), region = 77 }

</bundles_post_ra>
